<compile_context>
chip_gen: v5e
topology: v5e:2x2
jax: 0.10.0
libtpu: 0.0.40
codegen_flags: <defaults>
</compile_context>

<pallas_src>
import functools

import jax
import jax.numpy as jnp
from jax import lax
from jax.experimental import pallas as pl
from jax.experimental.pallas import tpu as pltpu

BN_EPS = 1e-5
MAX_TK = 2048
VMEM_LIMIT_BYTES = 32 * 1024 * 1024     # explicit scoped-VMEM limit (<= physical on all gens)
VMEM_TILE_BUDGET = 12 * 1024 * 1024     # per-call tile budget (double-buffered estimate)


def _round_up(n, m):
    return (n + m - 1) // m * m


def _pick_tiles(mp, np_, kp, out_bytes):
    """Pick (tm, tn, tk).

    Preference order: (a) >=2 independent output blocks (keeps both v7x
    TensorCores busy), (b) fewest grid steps (per-step overhead ~0.35us
    dominates the big-M / small-N layers), (c) smallest VMEM, all subject to a
    double-buffered VMEM budget.  TK is capped at 1024 for large tiles so v5e's
    smaller scoped VMEM keeps headroom.
    """
    best = None
    for tn in (2048, 1024, 512, 256, 128):
        if np_ % tn:
            continue
        for tm in (4096, 2048, 1024, 512, 256, 128):
            if mp % tm:
                continue
            tk_cap = 1024 if (tm >= 512 or tn >= 1024) else MAX_TK
            tk = min(kp, tk_cap)
            while kp % tk:
                tk -= 128
            vmem = (2 * 2 * (tm * tk + tk * tn)        # double-buffered bf16 inputs
                    + 4 * tm * tn                      # f32 accumulator (worst case)
                    + 2 * out_bytes * tm * tn          # double-buffered output
                    + 2 * 2 * 4 * tn)                  # scale / shift
            if vmem > VMEM_TILE_BUDGET:
                continue
            blocks = (mp // tm) * (np_ // tn)
            steps = blocks * (kp // tk)
            score = (0 if blocks >= 2 else 1, steps, vmem)
            if best is None or score < best[0]:
                best = (score, (tm, tn, tk))
    assert best is not None, (mp, np_, kp)
    return best[1]


# -----------------------------------------------------------------------------
# Pallas kernels: fused tiled matmul + per-channel affine + activation epilogue
# -----------------------------------------------------------------------------
def _act(y, act, slope):
    if act == "leaky":
        return jnp.where(y > 0, y, slope * y)
    if act == "relu":
        return jnp.maximum(y, 0.0)
    if act == "tanh":
        return jnp.tanh(y)
    return y


def _fused_matmul_k1_kernel(x_ref, w_ref, scale_ref, shift_ref, o_ref, *,
                            act, slope):
    # Whole K fits in one tile: write epilogue(dot) straight to o_ref, no
    # accumulator scratch round-trip.
    acc = jnp.dot(x_ref[...], w_ref[...], preferred_element_type=jnp.float32)
    y = acc * scale_ref[...] + shift_ref[...]
    o_ref[...] = _act(y, act, slope).astype(o_ref.dtype)


def _fused_matmul_kernel(x_ref, w_ref, scale_ref, shift_ref, o_ref, acc_ref, *,
                         act, slope):
    # NOTE: the init/finalize pattern below is only correct because the K
    # (reduction) axis is the LAST (innermost) grid dimension.  Keep it last.
    @pl.when(pl.program_id(2) == 0)
    def _():
        acc_ref[...] = jnp.zeros_like(acc_ref)

    acc_ref[...] += jnp.dot(x_ref[...], w_ref[...],
                            preferred_element_type=jnp.float32)

    @pl.when(pl.program_id(2) == pl.num_programs(2) - 1)
    def _():
        y = acc_ref[...] * scale_ref[...] + shift_ref[...]
        o_ref[...] = _act(y, act, slope).astype(o_ref.dtype)


def fused_matmul(x, w, scale, shift, act, slope=0.2, out_dtype=jnp.bfloat16):
    """act((x @ w) * scale + shift); bf16 MXU operands, f32 accumulate/epilogue."""
    M, K = x.shape
    K2, N = w.shape
    assert K == K2
    Mp, Kp, Np = _round_up(M, 128), _round_up(K, 128), _round_up(N, 128)
    out_bytes = jnp.dtype(out_dtype).itemsize
    tm, tn, tk = _pick_tiles(Mp, Np, Kp, out_bytes)

    xb = x.astype(jnp.bfloat16)
    wb = w.astype(jnp.bfloat16)
    if (Mp, Kp) != (M, K):
        xb = jnp.pad(xb, ((0, Mp - M), (0, Kp - K)))
    if (Kp, Np) != (K, N):
        wb = jnp.pad(wb, ((0, Kp - K), (0, Np - N)))
    sc = scale.astype(jnp.float32)
    sh = shift.astype(jnp.float32)
    if Np != N:
        sc = jnp.pad(sc, (0, Np - N))
        sh = jnp.pad(sh, (0, Np - N))
    sc = sc.reshape(1, Np)
    sh = sh.reshape(1, Np)

    nk = Kp // tk
    cost = pl.CostEstimate(
        flops=2 * Mp * Np * Kp, transcendentals=0,
        bytes_accessed=int(2 * (xb.size + wb.size) + Mp * Np * out_bytes))

    if nk == 1:
        kernel = functools.partial(_fused_matmul_k1_kernel, act=act,
                                   slope=slope)
        out = pl.pallas_call(
            kernel,
            out_shape=jax.ShapeDtypeStruct((Mp, Np), out_dtype),
            grid_spec=pltpu.PrefetchScalarGridSpec(
                num_scalar_prefetch=0,
                grid=(Mp // tm, Np // tn),
                in_specs=[
                    pl.BlockSpec((tm, tk), lambda i, j: (i, 0)),
                    pl.BlockSpec((tk, tn), lambda i, j: (0, j)),
                    pl.BlockSpec((1, tn), lambda i, j: (0, j)),
                    pl.BlockSpec((1, tn), lambda i, j: (0, j)),
                ],
                out_specs=pl.BlockSpec((tm, tn), lambda i, j: (i, j)),
            ),
            compiler_params=pltpu.CompilerParams(
                dimension_semantics=("parallel", "parallel"),
                vmem_limit_bytes=VMEM_LIMIT_BYTES),
            cost_estimate=cost,
        )(xb, wb, sc, sh)
    else:
        kernel = functools.partial(_fused_matmul_kernel, act=act, slope=slope)
        out = pl.pallas_call(
            kernel,
            out_shape=jax.ShapeDtypeStruct((Mp, Np), out_dtype),
            grid_spec=pltpu.PrefetchScalarGridSpec(
                num_scalar_prefetch=0,
                grid=(Mp // tm, Np // tn, nk),     # K axis MUST stay last
                in_specs=[
                    pl.BlockSpec((tm, tk), lambda i, j, k: (i, k)),
                    pl.BlockSpec((tk, tn), lambda i, j, k: (k, j)),
                    pl.BlockSpec((1, tn), lambda i, j, k: (0, j)),
                    pl.BlockSpec((1, tn), lambda i, j, k: (0, j)),
                ],
                out_specs=pl.BlockSpec((tm, tn), lambda i, j, k: (i, j)),
                scratch_shapes=[pltpu.VMEM((tm, tn), jnp.float32)],
            ),
            compiler_params=pltpu.CompilerParams(
                dimension_semantics=("parallel", "parallel", "arbitrary"),
                vmem_limit_bytes=VMEM_LIMIT_BYTES),
            cost_estimate=cost,
        )(xb, wb, sc, sh)

    if (Mp, Np) != (M, N):
        out = out[:M, :N]
    return out


# -----------------------------------------------------------------------------
# Conv2d(k=4, s=2, p=1): im2col + fused Pallas matmul
# -----------------------------------------------------------------------------
def conv4x4_s2(x, wm, scale, shift, act, slope=0.2, out_dtype=jnp.bfloat16):
    # x: (N, H, W, Cin) NHWC; wm: (16*Cin, Cout) in (ky, kx, cin) row order.
    n, h, w, cin = x.shape
    cout = wm.shape[-1]
    ho, wo = h // 2, w // 2
    xp = jnp.pad(x, ((0, 0), (1, 1), (1, 1), (0, 0)))
    # TODO(synk): this 16-tap stride-2 im2col still materializes in HBM (bf16).
    patches = [xp[:, ky:ky + 2 * ho:2, kx:kx + 2 * wo:2, :]
               for ky in range(4) for kx in range(4)]
    xm = jnp.concatenate(patches, axis=-1).reshape(n * ho * wo, 16 * cin)
    y = fused_matmul(xm, wm, scale, shift, act, slope, out_dtype)
    return y.reshape(n, ho, wo, cout)


# -----------------------------------------------------------------------------
# ConvTranspose2d(k=4, s=2, p=1) via the "Z-trick":
#   Z[iy,ix, (a,b,dy,dx,co)] = sum_ci x[iy,ix,ci] * w[ci,co,KY[a][dy],KX[b][dx]]
#   O[2y+a, 2x+b, co]        = act( sum_{dy,dx} Zp[y+OFF[a][dy], x+OFF[b][dx],
#                                                  (a,b,dy,dx,co)] + shift[co] )
# where Zp is Z zero-padded by 1 in both spatial dims (BN scale is folded into
# the matmul epilogue).  Only one (M, Cin) x (Cin, 16*Cout) matmul per layer;
# no parity patch tensor is ever materialized.
# -----------------------------------------------------------------------------
_KY_TAB = [[3, 1], [2, 0]]    # kernel tap for (output parity, tap index)
_OFF_TAB = [[0, 1], [1, 2]]   # padded-input offset for (output parity, tap index)


def dec_weight_to_zmat(w_pt):
    # w_pt: (Cin, Cout, 4, 4) PyTorch ConvTranspose2d layout ->
    # (Cin, 16*Cout) with columns ordered (a, b, dy, dx) major, cout minor.
    cols = []
    for a in range(2):
        for b in range(2):
            for dy in range(2):
                for dx in range(2):
                    cols.append(w_pt[:, :, _KY_TAB[a][dy], _KY_TAB[b][dx]])
    return jnp.concatenate(cols, axis=1)


def deconv4x4_s2(x, wm, scale, shift, act, slope=0.2, out_dtype=jnp.bfloat16):
    # x: (N, H, W, Cin) NHWC; wm: (Cin, 16*Cout) from dec_weight_to_zmat.
    n, h, w, cin = x.shape
    cout = wm.shape[-1] // 16
    xm = x.reshape(n * h * w, cin)

    scale16 = jnp.tile(scale.astype(jnp.float32), 16)   # matches column order
    z_dtype = (jnp.float32 if jnp.dtype(out_dtype) == jnp.dtype(jnp.float32)
               else jnp.bfloat16)
    z = fused_matmul(xm, wm, scale16, jnp.zeros_like(scale16), act="none",
                     out_dtype=z_dtype)
    z = z.reshape(n, h, w, 2, 2, 2, 2, cout)             # (a, b, dy, dx, cout)
    zp = jnp.pad(z, ((0, 0), (1, 1), (1, 1),
                     (0, 0), (0, 0), (0, 0), (0, 0), (0, 0)))

    shift_f = shift.astype(jnp.float32)
    rows = []
    for a in range(2):
        cols_ = []
        for b in range(2):
            acc = shift_f
            for dy in range(2):
                for dx in range(2):
                    oy, ox = _OFF_TAB[a][dy], _OFF_TAB[b][dx]
                    acc = acc + zp[:, oy:oy + h, ox:ox + w,
                                   a, b, dy, dx, :].astype(jnp.float32)
            cols_.append(_act(acc, act, slope))
        rows.append(jnp.stack(cols_, axis=0))
    y = jnp.stack(rows, axis=0)                          # (2a, 2b, n, h, w, c)
    y = jnp.transpose(y, (2, 3, 0, 4, 1, 5))             # (n, h, 2, w, 2, c)
    return y.reshape(n, 2 * h, 2 * w, cout).astype(out_dtype)


# -----------------------------------------------------------------------------
# Parameter init (deterministic, synthetic).  BN running stats: mean=0, var=1.
# Weights are stored pre-packed in matmul layout, bf16.
# -----------------------------------------------------------------------------
ENC_SPECS = [("conv1", 1, 64, False), ("conv2", 64, 128, True),
             ("conv3", 128, 256, True), ("conv4", 256, 512, True),
             ("conv5", 512, 512, True), ("conv6", 512, 512, True),
             ("conv7", 512, 512, True), ("conv8", 512, 512, True)]
DEC_SPECS = [("deconv8", 512, 512, True), ("deconv7", 1024, 512, True),
             ("deconv6", 1024, 512, True), ("deconv5", 1024, 512, True),
             ("deconv4", 1024, 256, True), ("deconv3", 512, 128, True),
             ("deconv2", 256, 64, True), ("deconv1", 128, 1, False)]


def init_params(key):
    params = {}
    for i, (name, cin, cout, has_bn) in enumerate(ENC_SPECS + DEC_SPECS):
        k = jax.random.fold_in(key, i)
        kw, kb, kg, kbeta = jax.random.split(k, 4)
        is_dec = name.startswith("deconv")
        if is_dec:
            wgt = 0.05 * jax.random.normal(kw, (cin, cout, 4, 4), jnp.float32)
            wmat = dec_weight_to_zmat(wgt).astype(jnp.bfloat16)
        else:
            wgt = 0.05 * jax.random.normal(kw, (4, 4, cin, cout), jnp.float32)
            wmat = wgt.reshape(16 * cin, cout).astype(jnp.bfloat16)
        bias = 0.05 * jax.random.normal(kb, (cout,), jnp.float32)
        if has_bn:
            gamma = 1.0 + 0.1 * jax.random.normal(kg, (cout,), jnp.float32)
            beta = 0.1 * jax.random.normal(kbeta, (cout,), jnp.float32)
            scale = gamma / jnp.sqrt(1.0 + BN_EPS)        # running_var = 1
            shift = bias * scale + beta                   # running_mean = 0
        else:
            scale = jnp.ones((cout,), jnp.float32)
            shift = bias
        params[name] = {"w": wmat, "scale": scale, "shift": shift}
    return params


# -----------------------------------------------------------------------------
# Full Generator forward (NCHW in / NCHW out, like the PyTorch module)
# -----------------------------------------------------------------------------
def generator_forward(params, x_nchw):
    x = jnp.transpose(x_nchw, (0, 2, 3, 1)).astype(jnp.bfloat16)  # NCHW -> NHWC

    def enc(name, t):
        p = params[name]
        return conv4x4_s2(t, p["w"], p["scale"], p["shift"], "leaky", 0.2)

    def dec(name, t, act="relu", out_dtype=jnp.bfloat16):
        p = params[name]
        return deconv4x4_s2(t, p["w"], p["scale"], p["shift"], act,
                            out_dtype=out_dtype)

    enc1 = enc("conv1", x)
    enc2 = enc("conv2", enc1)
    enc3 = enc("conv3", enc2)
    enc4 = enc("conv4", enc3)
    enc5 = enc("conv5", enc4)
    enc6 = enc("conv6", enc5)
    enc7 = enc("conv7", enc6)
    enc8 = enc("conv8", enc7)

    # TODO(synk): skip-connection concats are still HBM copies; feeding both
    # sources through a segmented K reduction would remove one memory pass.
    d8 = jnp.concatenate([dec("deconv8", enc8), enc7], axis=-1)
    d7 = jnp.concatenate([dec("deconv7", d8), enc6], axis=-1)
    d6 = jnp.concatenate([dec("deconv6", d7), enc5], axis=-1)
    d5 = jnp.concatenate([dec("deconv5", d6), enc4], axis=-1)
    d4 = jnp.concatenate([dec("deconv4", d5), enc3], axis=-1)
    d3 = jnp.concatenate([dec("deconv3", d4), enc2], axis=-1)
    d2 = jnp.concatenate([dec("deconv2", d3), enc1], axis=-1)
    d1 = dec("deconv1", d2, act="tanh", out_dtype=jnp.float32)

    return jnp.transpose(d1, (0, 3, 1, 2))                # NHWC -> NCHW


# -----------------------------------------------------------------------------
# Small numerical self-checks of the conv / deconv lowering against lax convs
# (operands quantized to bf16 so both sides accumulate the same products).
# -----------------------------------------------------------------------------
def _q(a):
    return a.astype(jnp.bfloat16).astype(jnp.float32)


def _self_check(key):
    k1, k2, k3 = jax.random.split(key, 3)
    cin, cout, hh = 3, 5, 8
    x = jax.random.normal(k1, (2, cin, hh, hh), jnp.float32)
    x_nhwc = jnp.transpose(x, (0, 2, 3, 1))
    ones = jnp.ones((cout,), jnp.float32)
    zeros = jnp.zeros((cout,), jnp.float32)

    # Conv2d(k=4, s=2, p=1)
    w_hwio = jax.random.normal(k2, (4, 4, cin, cout), jnp.float32)
    mine = conv4x4_s2(x_nhwc, w_hwio.reshape(16 * cin, cout), ones, zeros,
                      act="none", out_dtype=jnp.float32)
    mine = jnp.transpose(mine, (0, 3, 1, 2))
    w_oihw = jnp.transpose(w_hwio, (3, 2, 0, 1))
    ref = lax.conv_general_dilated(_q(x), _q(w_oihw), (2, 2),
                                   [(1, 1), (1, 1)],
                                   dimension_numbers=("NCHW", "OIHW", "NCHW"))
    assert float(jnp.max(jnp.abs(mine - ref))) < 3e-2, "conv check failed"

    # ConvTranspose2d(k=4, s=2, p=1)
    w_pt = jax.random.normal(k3, (cin, cout, 4, 4), jnp.float32)
    mine = deconv4x4_s2(x_nhwc, dec_weight_to_zmat(w_pt), ones, zeros,
                        act="none", out_dtype=jnp.float32)
    mine = jnp.transpose(mine, (0, 3, 1, 2))
    w_flip = w_pt[:, :, ::-1, ::-1]
    w_oihw = jnp.transpose(w_flip, (1, 0, 2, 3))
    ref = lax.conv_general_dilated(_q(x), _q(w_oihw), (1, 1),
                                   [(2, 2), (2, 2)], lhs_dilation=(2, 2),
                                   dimension_numbers=("NCHW", "OIHW", "NCHW"))
    assert float(jnp.max(jnp.abs(mine - ref))) < 3e-2, "deconv check failed"


if __name__ == "__main__":
    root = jax.random.PRNGKey(0)
    k_check, k_param, k_x = jax.random.split(root, 3)

    _self_check(k_check)

    params = init_params(k_param)
    # 8 stride-2 encoder stages require spatial size 256 (256 -> ... -> 1);
    # this is the smallest input the module architecture admits.
    x = jax.random.normal(k_x, (1, 1, 256, 256), jnp.float32)

    fwd = jax.jit(generator_forward)
    y = jax.block_until_ready(fwd(params, x))

    assert y.shape == (1, 1, 256, 256), y.shape
    assert bool(jnp.all(jnp.isfinite(y)))
    assert float(jnp.max(jnp.abs(y))) <= 1.0 + 1e-5  # tanh output range
    print("KERNEL_OK")
</pallas_src>

<mosaic_0001>
module attributes {stable_mosaic.version = 11 : i64} {
  func.func @_fused_matmul_k1_kernel(%arg0: i32, %arg1: i32, %arg2: memref<128x128xbf16, #tpu.memory_space<vmem>>, %arg3: memref<128x128xbf16, #tpu.memory_space<vmem>>, %arg4: memref<1x128xf32, #tpu.memory_space<vmem>>, %arg5: memref<1x128xf32, #tpu.memory_space<vmem>>, %arg6: memref<128x128xf32, #tpu.memory_space<vmem>>) attributes {dimension_semantics = [#tpu.dimension_semantics<parallel>, #tpu.dimension_semantics<parallel>], iteration_bounds = array<i64: 1, 1>, scalar_prefetch = 0 : i64, scratch_operands = 0 : i64, tpu.core_type = #tpu.core_type<tc>, window_params = [{transform_indices = @transform_0, window_bounds = array<i64: 128, 128>}, {transform_indices = @transform_1, window_bounds = array<i64: 128, 128>}, {transform_indices = @transform_2, window_bounds = array<i64: 1, 128>}, {transform_indices = @transform_3, window_bounds = array<i64: 1, 128>}, {transform_indices = @transform_4, window_bounds = array<i64: 128, 128>}]} {
    %c0 = arith.constant 0 : index
    %c0_0 = arith.constant 0 : index
    %0 = vector.load %arg2[%c0, %c0_0] : memref<128x128xbf16, #tpu.memory_space<vmem>>, vector<128x128xbf16>
    %c0_1 = arith.constant 0 : index
    %c0_2 = arith.constant 0 : index
    %1 = vector.load %arg3[%c0_1, %c0_2] : memref<128x128xbf16, #tpu.memory_space<vmem>>, vector<128x128xbf16>
    %cst = arith.constant dense<0.000000e+00> : vector<128x128xf32>
    %2 = tpu.matmul %0, %1, %cst {dimension_numbers = #tpu.dot_dimension_numbers<[1], [0], [0], [1], [0, 0, 1, 1], [], []>} : vector<128x128xbf16>, vector<128x128xbf16>, vector<128x128xf32> -> vector<128x128xf32>
    %c0_3 = arith.constant 0 : index
    %c0_4 = arith.constant 0 : index
    %3 = vector.load %arg4[%c0_3, %c0_4] : memref<1x128xf32, #tpu.memory_space<vmem>>, vector<1x128xf32>
    %4 = vector.broadcast %3 : vector<1x128xf32> to vector<128x128xf32>
    %5 = arith.mulf %2, %4 : vector<128x128xf32>
    %c0_5 = arith.constant 0 : index
    %c0_6 = arith.constant 0 : index
    %6 = vector.load %arg5[%c0_5, %c0_6] : memref<1x128xf32, #tpu.memory_space<vmem>>, vector<1x128xf32>
    %7 = vector.broadcast %6 : vector<1x128xf32> to vector<128x128xf32>
    %8 = arith.addf %5, %7 : vector<128x128xf32>
    %c0_7 = arith.constant 0 : index
    %c0_8 = arith.constant 0 : index
    %9 = vector.load %arg6[%c0_7, %c0_8] : memref<128x128xf32, #tpu.memory_space<vmem>>, vector<128x128xf32>
    tpu.vector_store %arg6[%c0_7, %c0_8], %8 {strides = array<i32>} : memref<128x128xf32, #tpu.memory_space<vmem>>, vector<128x128xf32>,
    return
  }
  func.func @transform_0(%arg0: i32, %arg1: i32) -> (i32, i32) {
    %c0_i32 = arith.constant 0 : i32
    %c0_i32_0 = arith.constant 0 : i32
    return %arg0, %c0_i32 : i32, i32
  }
  func.func @transform_1(%arg0: i32, %arg1: i32) -> (i32, i32) {
    %c0_i32 = arith.constant 0 : i32
    %c0_i32_0 = arith.constant 0 : i32
    return %c0_i32, %arg1 : i32, i32
  }
  func.func @transform_2(%arg0: i32, %arg1: i32) -> (i32, i32) {
    %c0_i32 = arith.constant 0 : i32
    %c0_i32_0 = arith.constant 0 : i32
    return %c0_i32, %arg1 : i32, i32
  }
  func.func @transform_3(%arg0: i32, %arg1: i32) -> (i32, i32) {
    %c0_i32 = arith.constant 0 : i32
    %c0_i32_0 = arith.constant 0 : i32
    return %c0_i32, %arg1 : i32, i32
  }
  func.func @transform_4(%arg0: i32, %arg1: i32) -> (i32, i32) {
    %c0_i32 = arith.constant 0 : i32
    return %arg0, %arg1 : i32, i32
  }
}

</mosaic_0001>

<bundles_post_ra>
// kernel: tpu_custom_call.1
= control target key start
LH: loop header
LB: loop body
LE: loop exit
PB: predicated region body
PF: predicated region fallthrough
CT: control target
= control target key end

     0   :  { %9 = vsyncpa [#allocation3], 0  ;;  %s577_s0 = inlined_call_operand.hbm [shape: bf16[128,128], index: 0, kind: input, shape index: {}]   ;;  %s578_s1 = inlined_call_operand.hbm [shape: bf16[128,128], index: 1, kind: input, shape index: {}]   ;;  %s579_s2 = inlined_call_operand.vmem [shape: f32[1,128], index: 2, kind: input, shape index: {}]   ;;  %s580_s3 = inlined_call_operand.vmem [shape: f32[1,128], index: 3, kind: input, shape index: {}]   ;;  %s581_s4 = inlined_call_operand.hbm [shape: f32[128,128], index: 4, kind: output, shape index: {}]  }
   0x1   :  { %10 = vsyncpa [#allocation6], 0 }
   0x2   :  { %11 = vsyncpa [#allocation4], 0  ;;  %s16_s17 = sshll.u32 %s577_s0, 4  ;;  %s494_s18 = smov [#allocation2]   ;;  %s17_s17 = int_to_ptr.hbm [resolvable:$true] %s16_s17 }
   0x3   :  { %s18_s19 = sshll.u32 %s494_s18, 4  ;;  %s29_s22 = sshll.u32 %s578_s1, 4  ;;  %s19_s19 = int_to_ptr.vmem [resolvable:$true] %s18_s19  ;;  %s30_s22 = int_to_ptr.hbm [resolvable:$true] %s29_s22 }
   0x4   :  { %s495_s23 = smov 64   ;;  %s496_s24 = smov 4  }
   0x5   :  { %24 = dma.hbm_to_vmem [thread:$0]  %s17_s17, 1024, %s19_s19, [#allocation3], %s495_s23, %s495_s23, %s496_s24  }
   0x6   :  { %s497_s25 = smov [#allocation5]  }
   0x7   :  { %s31_s26 = sshll.u32 %s497_s25, 4  ;;  %s32_s26 = int_to_ptr.vmem [resolvable:$true] %s31_s26 }
   0x8   :  { %37 = dma.hbm_to_vmem [thread:$0]  %s30_s22, 1024, %s32_s26, [#allocation6], %s495_s23, %s495_s23, %s496_s24  }
   0x9   :  { %488 = dma.done.wait [#allocation3], 1024  }
   0xa   :  { %489 = vsyncadd [#allocation3], 4294966272 }
   0xb   :  { %490 = dma.done.wait [#allocation6], 1024  }
   0xc   :  { %491 = vsyncadd [#allocation6], 4294966272  ;;  %v382_v0 = vld [vmem:[#allocation5 + $0x38] sm:$0xff]  ;;  %v381_v1 = vld [vmem:[#allocation5 + $0x30] sm:$0xff]  ;;  %s289_s5 = sshll.u32 %s581_s4, 4  ;;  %s499_s6 = smov 128   ;;  %s290_s5 = int_to_ptr.hbm [resolvable:$true] %s289_s5 }
   0xd   :  { %178 = vmatpush.bf16.msra.mxu0 %v382_v0  ;;  %383 = vmatpush.bf16.msra.mxu1 %v382_v0  ;;  %v380_v2 = vld [vmem:[#allocation5 + $0x28] sm:$0xff]  ;;  %v379_v3 = vld [vmem:[#allocation5 + $0x20] sm:$0xff]  ;;  %v378_v4 = vld [vmem:[#allocation5 + $0x18] sm:$0xff]  ;;  %s500_s7 = smov 8  }
   0xe   :  { %384 = vmatpush.bf16.msra.mxu2 %v382_v0  ;;  %385 = vmatpush.bf16.msra.mxu3 %v382_v0  ;;  %v377_v5 = vld [vmem:[#allocation5 + $0x10] sm:$0xff]  ;;  %v376_v6 = vld [vmem:[#allocation5 + $0x8] sm:$0xff]  ;;  %v375_v7 = vld [vmem:[#allocation5] sm:$0xff] }
   0xf   :  { %v367_v8 = vld [vmem:[#allocation2] sm:$0xff]  ;;  %v369_v9 = vld [vmem:[#allocation2 + $0x10] sm:$0xff]  ;;  %v368_v12 = vld [vmem:[#allocation2 + $0x8] sm:$0xff] }
  0x10   :  { %v371_v10 = vld [vmem:[#allocation2 + $0x20] sm:$0xff]  ;;  %v373_v11 = vld [vmem:[#allocation2 + $0x30] sm:$0xff]  ;;  %v370_v13 = vld [vmem:[#allocation2 + $0x18] sm:$0xff] }
  0x11   :  { %179 = vmatpush.bf16.msra.mxu0 %v381_v1  ;;  %386 = vmatpush.bf16.msra.mxu1 %v381_v1  ;;  %v372_v14 = vld [vmem:[#allocation2 + $0x28] sm:$0xff]  ;;  %v374_v15 = vld [vmem:[#allocation2 + $0x38] sm:$0xff]  ;;  %v535_v16 = vld [vmem:[%s579_s2] ss:$0 sm:$0xff]  ;;  %s498_s2 = smov [#allocation7]  }
  0x12   :  { %387 = vmatpush.bf16.msra.mxu2 %v381_v1  ;;  %388 = vmatpush.bf16.msra.mxu3 %v381_v1  ;;  %v540_v17 = vld [vmem:[%s580_s3] ss:$0 sm:$0xff]  ;;  %s287_s3 = sshll.u32 %s498_s2, 4  ;;  %s288_s3 = int_to_ptr.vmem [resolvable:$true] %s287_s3 }
  0x15   :  { %180 = vmatpush.bf16.msra.mxu0 %v380_v2  ;;  %389 = vmatpush.bf16.msra.mxu1 %v380_v2 }
  0x16   :  { %390 = vmatpush.bf16.msra.mxu2 %v380_v2  ;;  %391 = vmatpush.bf16.msra.mxu3 %v380_v2 }
  0x19   :  { %181 = vmatpush.bf16.msra.mxu0 %v379_v3  ;;  %392 = vmatpush.bf16.msra.mxu1 %v379_v3 }
  0x1a   :  { %393 = vmatpush.bf16.msra.mxu2 %v379_v3  ;;  %394 = vmatpush.bf16.msra.mxu3 %v379_v3 }
  0x1d   :  { %182 = vmatpush.bf16.msra.mxu0 %v378_v4  ;;  %395 = vmatpush.bf16.msra.mxu1 %v378_v4 }
  0x1e   :  { %396 = vmatpush.bf16.msra.mxu2 %v378_v4  ;;  %397 = vmatpush.bf16.msra.mxu3 %v378_v4 }
  0x21   :  { %183 = vmatpush.bf16.msra.mxu0 %v377_v5  ;;  %398 = vmatpush.bf16.msra.mxu1 %v377_v5 }
  0x22   :  { %399 = vmatpush.bf16.msra.mxu2 %v377_v5  ;;  %400 = vmatpush.bf16.msra.mxu3 %v377_v5 }
  0x25   :  { %184 = vmatpush.bf16.msra.mxu0 %v376_v6  ;;  %401 = vmatpush.bf16.msra.mxu1 %v376_v6 }
  0x26   :  { %402 = vmatpush.bf16.msra.mxu2 %v376_v6  ;;  %403 = vmatpush.bf16.msra.mxu3 %v376_v6 }
  0x29   :  { %185 = vmatpush.bf16.msra.mxu0 %v375_v7  ;;  %404 = vmatpush.bf16.msra.mxu1 %v375_v7 }
  0x2a   :  { %405 = vmatpush.bf16.msra.mxu2 %v375_v7  ;;  %406 = vmatpush.bf16.msra.mxu3 %v375_v7 }
  0x2c   :  { %186 = vmatmul.bf16.vlgmr.msra.gmra.mxu0 %v367_v8  ;;  %196 = vmatmul.bf16.vlgmr.msra.gmra.mxu1 %v369_v9 }
  0x2d   :  { %206 = vmatmul.bf16.vlgmr.msra.gmra.mxu2 %v371_v10  ;;  %216 = vmatmul.bf16.vlgmr.msra.gmra.mxu3 %v373_v11 }
  0x3c   :  { %191 = vmatmul.bf16.gmra.mxu0 %v368_v12  ;;  %201 = vmatmul.bf16.gmra.mxu1 %v370_v13 }
  0x3d   :  { %211 = vmatmul.bf16.gmra.mxu2 %v372_v14  ;;  %221 = vmatmul.bf16.gmra.mxu3 %v374_v15 }
  0xa9   :  { %v187_v18 = vpop.f32.mrf.mxu0  ;;  %v197_v19 = vpop.f32.mrf.mxu1 }
  0xaa   :  { %v231_v20 = vmul.f32 %v535_v16, %v187_v18  ;;  %v235_v21 = vmul.f32 %v535_v16, %v197_v19 }
  0xac   :  { %v251_v22 = vadd.f32 %v540_v17, %v231_v20  ;;  %v255_v23 = vadd.f32 %v540_v17, %v235_v21 }
  0xae   :  { %267 = vst [vmem:[#allocation7] sm:$0xff] %v251_v22 }
  0xaf   :  { %271 = vst [vmem:[#allocation7 + $0x20] sm:$0xff] %v255_v23 }
  0xb0   :  { %v207_v24 = vpop.f32.mrf.mxu2  ;;  %v217_v25 = vpop.f32.mrf.mxu3 }
  0xb1   :  { %v239_v26 = vmul.f32 %v535_v16, %v207_v24  ;;  %v243_v27 = vmul.f32 %v535_v16, %v217_v25  ;;  %v189_v28 = vpop.f32.mrf.mxu0  ;;  %v199_v29 = vpop.f32.mrf.mxu1 }
  0xb2   :  { %v232_v30 = vmul.f32 %v535_v16, %v189_v28  ;;  %v236_v31 = vmul.f32 %v535_v16, %v199_v29 }
  0xb3   :  { %v259_v32 = vadd.f32 %v540_v17, %v239_v26  ;;  %v263_v33 = vadd.f32 %v540_v17, %v243_v27 }
  0xb4   :  { %v252_v34 = vadd.f32 %v540_v17, %v232_v30  ;;  %v256_v35 = vadd.f32 %v540_v17, %v236_v31 }
  0xb5   :  { %275 = vst [vmem:[#allocation7 + $0x40] sm:$0xff] %v259_v32 }
  0xb6   :  { %279 = vst [vmem:[#allocation7 + $0x60] sm:$0xff] %v263_v33 }
  0xb7   :  { %268 = vst [vmem:[#allocation7 + $0x8] sm:$0xff] %v252_v34 }
  0xb8   :  { %272 = vst [vmem:[#allocation7 + $0x28] sm:$0xff] %v256_v35  ;;  %v209_v36 = vpop.f32.mrf.mxu2  ;;  %v219_v37 = vpop.f32.mrf.mxu3 }
  0xb9   :  { %v240_v38 = vmul.f32 %v535_v16, %v209_v36  ;;  %v244_v39 = vmul.f32 %v535_v16, %v219_v37  ;;  %v192_v40 = vpop.f32.mrf.mxu0  ;;  %v202_v41 = vpop.f32.mrf.mxu1 }
  0xba   :  { %v233_v42 = vmul.f32 %v535_v16, %v192_v40  ;;  %v237_v43 = vmul.f32 %v535_v16, %v202_v41 }
  0xbb   :  { %v260_v44 = vadd.f32 %v540_v17, %v240_v38  ;;  %v264_v45 = vadd.f32 %v540_v17, %v244_v39 }
  0xbc   :  { %v253_v46 = vadd.f32 %v540_v17, %v233_v42  ;;  %v257_v47 = vadd.f32 %v540_v17, %v237_v43 }
  0xbd   :  { %276 = vst [vmem:[#allocation7 + $0x48] sm:$0xff] %v260_v44 }
  0xbe   :  { %280 = vst [vmem:[#allocation7 + $0x68] sm:$0xff] %v264_v45 }
  0xbf   :  { %269 = vst [vmem:[#allocation7 + $0x10] sm:$0xff] %v253_v46 }
  0xc0   :  { %273 = vst [vmem:[#allocation7 + $0x30] sm:$0xff] %v257_v47  ;;  %v212_v48 = vpop.f32.mrf.mxu2  ;;  %v222_v49 = vpop.f32.mrf.mxu3 }
  0xc1   :  { %v241_v50 = vmul.f32 %v535_v16, %v212_v48  ;;  %v245_v51 = vmul.f32 %v535_v16, %v222_v49  ;;  %v194_v52 = vpop.f32.mrf.mxu0  ;;  %v204_v53 = vpop.f32.mrf.mxu1 }
  0xc2   :  { %v234_v54 = vmul.f32 %v535_v16, %v194_v52  ;;  %v238_v55 = vmul.f32 %v535_v16, %v204_v53 }
  0xc3   :  { %v261_v56 = vadd.f32 %v540_v17, %v241_v50  ;;  %v265_v57 = vadd.f32 %v540_v17, %v245_v51 }
  0xc4   :  { %v254_v58 = vadd.f32 %v540_v17, %v234_v54  ;;  %v258_v59 = vadd.f32 %v540_v17, %v238_v55 }
  0xc5   :  { %277 = vst [vmem:[#allocation7 + $0x50] sm:$0xff] %v261_v56 }
  0xc6   :  { %281 = vst [vmem:[#allocation7 + $0x70] sm:$0xff] %v265_v57 }
  0xc7   :  { %270 = vst [vmem:[#allocation7 + $0x18] sm:$0xff] %v254_v58 }
  0xc8   :  { %274 = vst [vmem:[#allocation7 + $0x38] sm:$0xff] %v258_v59  ;;  %v214_v60 = vpop.f32.mrf.mxu2  ;;  %v224_v61 = vpop.f32.mrf.mxu3 }
  0xc9   :  { %v242_v62 = vmul.f32 %v535_v16, %v214_v60  ;;  %v246_v63 = vmul.f32 %v535_v16, %v224_v61 }
  0xcb   :  { %v262_v0 = vadd.f32 %v540_v17, %v242_v62  ;;  %v266_v1 = vadd.f32 %v540_v17, %v246_v63 }
  0xcd   :  { %278 = vst [vmem:[#allocation7 + $0x58] sm:$0xff] %v262_v0 }
  0xce   :  { %282 = vst [vmem:[#allocation7 + $0x78] sm:$0xff] %v266_v1 }
  0xcf   :  { %295 = dma.vmem_to_hbm [thread:$0]  %s288_s3, 2048, %s290_s5, [#allocation4], %s499_s6, %s499_s6, %s500_s7  }
  0xd0   :  { %492 = dma.done.wait [#allocation4], 2048  }
  0xd1   :  { %493 = vsyncadd [#allocation4], 4294965248 }
  0xd2   :  { %300 = vsyncpa [#allocation3], 1 }
  0xd3   :  { %301 = vsyncpa [#allocation6], 1 }
  0xd4   :  { %302 = vsyncpa [#allocation4], 1 }

</bundles_post_ra>
